<compile_context>
chip_gen: v6e
topology: v6e:2x2x1
jax: 0.10.0
libtpu: 0.0.40
codegen_flags: <defaults>
</compile_context>

<pallas_src>
import functools
import math

import jax
import jax.numpy as jnp
from jax.experimental import pallas as pl
from jax.experimental.pallas import tpu as pltpu

EPS = 1e-6


def _round_up(x, m):
    return ((x + m - 1) // m) * m


def _mcrmse_partial_kernel(yhat_ref, y_ref, out_ref, *, total_rows, mask_rows,
                           out_rows):
    """Write this block's partial column sums of (yhat - y)^2, shape (out_rows, Ncols)."""
    d = yhat_ref[...].astype(jnp.float32) - y_ref[...].astype(jnp.float32)
    d2 = d * d
    tm = d2.shape[0]

    if mask_rows:
        # Only emitted when the last block is partial; where() is NaN-safe for
        # the unspecified contents of padded rows.
        i = pl.program_id(0)
        row_ids = i * tm + jax.lax.broadcasted_iota(jnp.int32, (tm, 1), 0)
        d2 = jnp.where(row_ids < total_rows, d2, 0.0)

    # Sublane-aligned reduction: sum groups of `out_rows` rows with plain VPU
    # adds; the remaining collapse happens in the (tiny) JAX finalize.
    acc = d2[0:out_rows, :]
    for g in range(1, tm // out_rows):
        acc = acc + d2[g * out_rows:(g + 1) * out_rows, :]
    out_ref[...] = acc


def _pick_row_tile(n_rows, n_cols, itemsize, target_block_bytes=4 << 20):
    """Rows per block: largest packed-sublane multiple giving ~target VMEM bytes."""
    sub = max(8, 32 // itemsize)            # 8 for f32, 16 for bf16, 32 for int8/fp8
    if n_rows <= sub:
        return n_rows
    lane_bytes = _round_up(n_cols, 128) * itemsize   # real (padded) VMEM footprint
    rows = max(sub, (max(1, target_block_bytes // lane_bytes) // sub) * sub)
    return min(rows, (n_rows // sub) * sub)


def mcrmse_loss(yhat, y, eps=EPS, num_scored=None, row_block=None):
    """yhat, y: (B, S, C) arrays.  Returns scalar float32 MCRMSE."""
    assert yhat.shape == y.shape and yhat.ndim == 3
    B, S, C = yhat.shape
    itemsize = jnp.dtype(yhat.dtype).itemsize
    total = B * S * C

    # Lane-dense repack when possible (free, contiguous reshape); else (B, S*C).
    W = C * 128 // math.gcd(C, 128)          # lcm(C, 128): multiple of C and of 128
    if total % W == 0:
        R, Ncols = total // W, W
    else:
        R, Ncols = B, S * C
    yhat2 = yhat.reshape(R, Ncols)
    y2 = y.reshape(R, Ncols)

    tm = row_block if row_block is not None else _pick_row_tile(R, Ncols, itemsize)
    grid_n = pl.cdiv(R, tm)
    mask_rows = (R % tm) != 0
    out_rows = 8 if (tm >= 8 and tm % 8 == 0) else tm

    kernel = functools.partial(_mcrmse_partial_kernel, total_rows=R,
                               mask_rows=mask_rows, out_rows=out_rows)

    partial = pl.pallas_call(
        kernel,
        out_shape=jax.ShapeDtypeStruct((grid_n * out_rows, Ncols), jnp.float32),
        grid=(grid_n,),
        in_specs=[
            pl.BlockSpec((tm, Ncols), lambda i: (i, 0)),
            pl.BlockSpec((tm, Ncols), lambda i: (i, 0)),
        ],
        out_specs=pl.BlockSpec((out_rows, Ncols), lambda i: (i, 0)),
        compiler_params=pltpu.CompilerParams(
            dimension_semantics=("parallel",),     # both TCs stream on v7x
            vmem_limit_bytes=40 << 20),
        cost_estimate=pl.CostEstimate(
            flops=3 * R * Ncols,
            transcendentals=0,
            bytes_accessed=2 * R * Ncols * itemsize + grid_n * out_rows * Ncols * 4),
    )(yhat2, y2)

    # Tiny finalize: collapse partial rows, map columns -> channels (col % C),
    # per-channel SSE -> RMSE -> mean over scored channels.
    sse_per_col = partial.sum(axis=0)                          # (Ncols,)
    sse_per_channel = sse_per_col.reshape(-1, C).sum(axis=0)   # (C,)
    if num_scored is not None and num_scored < C:
        sse_per_channel = sse_per_channel[:num_scored]
    n = B * S
    return jnp.mean(jnp.sqrt(sse_per_channel / n + eps))


if __name__ == "__main__":
    key = jax.random.PRNGKey(0)
    k1, k2, k3, k4, k5, k6 = jax.random.split(key, 6)

    def ref_mcrmse(yh, yy, num_scored=None):
        mse = jnp.mean((yh - yy) ** 2, axis=(0, 1))
        if num_scored is not None:
            mse = mse[:num_scored]
        return jnp.mean(jnp.sqrt(mse + EPS))

    # 1) Shapes implied by the module (batch, seq, num_scored=3); fallback slab path.
    B, S, C = 2, 8, 3
    yhat = jax.random.normal(k1, (B, S, C), dtype=jnp.float32)
    y = jax.random.normal(k2, (B, S, C), dtype=jnp.float32)
    loss = jax.block_until_ready(mcrmse_loss(yhat, y))
    ref = ref_mcrmse(yhat, y)
    assert jnp.allclose(loss, ref, rtol=1e-5, atol=1e-6), (loss, ref)

    # 2) Tiled path: grid > 1 with a masked partial last block.
    B2, S2, C2 = 13, 16, 3
    yhat2 = jax.random.normal(k3, (B2, S2, C2), dtype=jnp.float32)
    y2 = jax.random.normal(k4, (B2, S2, C2), dtype=jnp.float32)
    loss2 = jax.block_until_ready(mcrmse_loss(yhat2, y2, row_block=8))
    ref2 = ref_mcrmse(yhat2, y2)
    assert jnp.allclose(loss2, ref2, rtol=1e-5, atol=1e-6), (loss2, ref2)

    # 3) Lane-dense repacked path (B*S*C divisible by lcm(C,128)), grid > 1,
    #    masked partial last block, plus num_scored < C handled in finalize.
    B3, S3, C3 = 16, 24, 4
    yhat3 = jax.random.normal(k5, (B3, S3, C3), dtype=jnp.float32)
    y3 = jax.random.normal(k6, (B3, S3, C3), dtype=jnp.float32)
    loss3 = jax.block_until_ready(mcrmse_loss(yhat3, y3))
    ref3 = ref_mcrmse(yhat3, y3)
    assert jnp.allclose(loss3, ref3, rtol=1e-5, atol=1e-6), (loss3, ref3)
    loss3b = jax.block_until_ready(mcrmse_loss(yhat3, y3, num_scored=2))
    ref3b = ref_mcrmse(yhat3, y3, num_scored=2)
    assert jnp.allclose(loss3b, ref3b, rtol=1e-5, atol=1e-6), (loss3b, ref3b)

    print("KERNEL_OK")
</pallas_src>

<mosaic_0001>
module attributes {stable_mosaic.version = 11 : i64} {
  func.func @_mcrmse_partial_kernel(%arg0: i32, %arg1: memref<2x24xf32, #tpu.memory_space<vmem>>, %arg2: memref<2x24xf32, #tpu.memory_space<vmem>>, %arg3: memref<2x24xf32, #tpu.memory_space<vmem>>) attributes {dimension_semantics = [#tpu.dimension_semantics<parallel>], iteration_bounds = array<i64: 1>, scalar_prefetch = 0 : i64, scratch_operands = 0 : i64, tpu.core_type = #tpu.core_type<tc>, window_params = [{transform_indices = @transform_0, window_bounds = array<i64: 2, 24>}, {transform_indices = @transform_1, window_bounds = array<i64: 2, 24>}, {transform_indices = @transform_2, window_bounds = array<i64: 2, 24>}]} {
    %c0 = arith.constant 0 : index
    %c0_0 = arith.constant 0 : index
    %0 = vector.load %arg1[%c0, %c0_0] : memref<2x24xf32, #tpu.memory_space<vmem>>, vector<2x24xf32>
    %c0_1 = arith.constant 0 : index
    %c0_2 = arith.constant 0 : index
    %1 = vector.load %arg2[%c0_1, %c0_2] : memref<2x24xf32, #tpu.memory_space<vmem>>, vector<2x24xf32>
    %2 = arith.subf %0, %1 : vector<2x24xf32>
    %3 = arith.mulf %2, %2 : vector<2x24xf32>
    %c0_3 = arith.constant 0 : index
    %c0_4 = arith.constant 0 : index
    %4 = vector.load %arg3[%c0_3, %c0_4] : memref<2x24xf32, #tpu.memory_space<vmem>>, vector<2x24xf32>
    tpu.vector_store %arg3[%c0_3, %c0_4], %3 {strides = array<i32>} : memref<2x24xf32, #tpu.memory_space<vmem>>, vector<2x24xf32>,
    return
  }
  func.func @transform_0(%arg0: i32) -> (i32, i32) {
    %c0_i32 = arith.constant 0 : i32
    %c0_i32_0 = arith.constant 0 : i32
    return %arg0, %c0_i32 : i32, i32
  }
  func.func @transform_1(%arg0: i32) -> (i32, i32) {
    %c0_i32 = arith.constant 0 : i32
    %c0_i32_0 = arith.constant 0 : i32
    return %arg0, %c0_i32 : i32, i32
  }
  func.func @transform_2(%arg0: i32) -> (i32, i32) {
    %c0_i32 = arith.constant 0 : i32
    %c0_i32_0 = arith.constant 0 : i32
    return %arg0, %c0_i32 : i32, i32
  }
}

</mosaic_0001>

<bundles_post_ra>
// kernel: tpu_custom_call.1
= control target key start
LH: loop header
LB: loop body
LE: loop exit
PB: predicated region body
PF: predicated region fallthrough
CT: control target
= control target key end

     0   :  { %7 = vsyncpa [#allocation3], 0  ;;  %s154_s0 = inlined_call_operand.hbm [shape: f32[2,24], index: 0, kind: input, shape index: {}]   ;;  %s155_s1 = inlined_call_operand.hbm [shape: f32[2,24], index: 1, kind: input, shape index: {}]   ;;  %s156_s2 = inlined_call_operand.hbm [shape: f32[2,24], index: 2, kind: output, shape index: {}]  }
   0x1   :  { %8 = vsyncpa [#allocation6], 0 }
   0x2   :  { %9 = vsyncpa [#allocation4], 0  ;;  %s127_s9 = smov [#allocation2]   ;;  %s128_s11 = smov [#allocation5]  }
   0x3   :  { %s16_s10 = sshll.u32 %s127_s9, 4  ;;  %s26_s12 = sshll.u32 %s128_s11, 4  ;;  %s17_s10 = int_to_ptr.vmem [resolvable:$true] %s16_s10  ;;  %s27_s12 = int_to_ptr.vmem [resolvable:$true] %s26_s12 }
   0x4   :  { %s69_s13 = scalar_lea.vmem %s17_s10, 32  ;;  %p74_p1 = scmp.lt.s32.totalorder %s17_s10, %s17_s10 }
   0x5   :  { %p70_p0 = scmp.ne.s32.totalorder %s17_s10, %s69_s13  ;;  %p75_p2 = scmp.lt.s32.totalorder %s69_s13, %s69_s13 }
   0x7   :  { %p76_p3 = por %p75_p2, %p74_p1 }
   0x9   :  { %p77_p4 = pnand %p76_p3, %p70_p0 }
   0xb   :  { %80 = shalt.err (!%p77_p4)
}
   0xc   :  { %19 = dma.hbm_to_vmem [thread:$0]  %s154_s0, 32, %s17_s10, [#allocation3]  }
   0xd   :  { %s89_s16 = scalar_lea.vmem %s27_s12, 32  ;;  %p94_p6 = scmp.lt.s32.totalorder %s27_s12, %s27_s12 }
   0xe   :  { %p90_p5 = scmp.ne.s32.totalorder %s27_s12, %s89_s16  ;;  %p95_p7 = scmp.lt.s32.totalorder %s89_s16, %s89_s16 }
  0x10   :  { %p96_p8 = por %p95_p7, %p94_p6 }
  0x12   :  { %p97_p9 = pnand %p96_p8, %p90_p5 }
  0x14   :  { %100 = shalt.err (!%p97_p9)
}
  0x15   :  { %29 = dma.hbm_to_vmem [thread:$0]  %s155_s1, 32, %s27_s12, [#allocation6]  }
  0x16   :  { %121 = dma.done.wait [#allocation3], 32  }
  0x17   :  { %122 = vsyncadd [#allocation3], 4294967264 }
  0x18   :  { %123 = dma.done.wait [#allocation6], 32  }
  0x19   :  { %124 = vsyncadd [#allocation6], 4294967264  ;;  %v36_v0 = vld [vmem:[#allocation2] sm:$0x3]  ;;  %v37_v1 = vld [vmem:[#allocation5] sm:$0x3] }
  0x1a   :  { %s129_s19 = smov [#allocation7]   ;;  %v38_v2 = vsub.f32 %v36_v0, %v37_v1  ;;  %vm40_vm0 = vcmask 189440  }
  0x1b   :  { %s48_s20 = sshll.u32 %s129_s19, 4  ;;  %s49_s20 = int_to_ptr.vmem [resolvable:$true] %s48_s20 }
  0x1c   :  { %v39_v3 = vmul.f32 %v38_v2, %v38_v2  ;;  %s101_s0 = scalar_lea.vmem %s49_s20, 32  ;;  %p106_p11 = scmp.lt.s32.totalorder %s49_s20, %s49_s20 }
  0x1d   :  { %p102_p10 = scmp.ne.s32.totalorder %s49_s20, %s101_s0  ;;  %p107_p12 = scmp.lt.s32.totalorder %s101_s0, %s101_s0 }
  0x1e   :  { %41 = vst.msk [vmem:[#allocation7] sm:$0x3] %vm40_vm0, %v39_v3 }
  0x1f   :  { %p108_p13 = por %p107_p12, %p106_p11 }
  0x21   :  { %p109_p0 = pnand %p108_p13, %p102_p10 }
  0x23   :  { %112 = shalt.err (!%p109_p0)
}
  0x24   :  { %51 = dma.vmem_to_hbm [thread:$0]  %s49_s20, 32, %s156_s2, [#allocation4]  }
  0x25   :  { %125 = dma.done.wait [#allocation4], 32  }
  0x26   :  { %126 = vsyncadd [#allocation4], 4294967264 }
  0x27   :  { %55 = vsyncpa [#allocation3], 1 }
  0x28   :  { %56 = vsyncpa [#allocation6], 1 }
  0x29   :  { %57 = vsyncpa [#allocation4], 1 }

</bundles_post_ra>
